<compile_context>
chip_gen: v5e
topology: v5e:2x2
jax: 0.10.0
libtpu: 0.0.40
codegen_flags: <defaults>
</compile_context>

<pallas_src>
import functools

import jax
import jax.numpy as jnp
from jax.experimental import pallas as pl
from jax.experimental.pallas import tpu as pltpu


def _round_up(n, m):
    return ((n + m - 1) // m) * m


def _mlp_kernel(*refs, num_layers, compute_dtype):
    """refs = (x_ref, w0, b0, w1, b1, ..., o_ref). All tiles already in VMEM."""
    x_ref = refs[0]
    o_ref = refs[-1]
    wb_refs = refs[1:-1]

    h = x_ref[...].astype(jnp.float32)        # (tm, Din) f32
    for i in range(num_layers):
        w = wb_refs[2 * i][...]               # (Kprev, Dnext_pad), compute_dtype
        b = wb_refs[2 * i + 1][...]           # (1, Dnext_pad) f32, broadcasts
        lhs = h.astype(compute_dtype)         # bf16 operands when enabled
        h = jnp.dot(lhs, w, preferred_element_type=jnp.float32) + b
        if i < num_layers - 1:
            h = jnp.maximum(h, 0.0)           # ReLU on hidden layers only
        # Dropout(p=0.0) is the identity; nothing to emit.
    o_ref[...] = h.astype(o_ref.dtype)


def prepare_params(params, compute_dtype=jnp.float32):
    """One-time prep: pad every (w, b) to lane-dense shapes and cast weights to
    the matmul compute dtype. Call ONCE and reuse across forward calls (keeps
    the per-call path free of jnp.pad / dtype-cast HBM copies)."""
    layers = []
    first = True
    for (w, b) in params:
        d_in, d_out = w.shape
        d_out_pad = _round_up(d_out, 128)
        # First layer keeps the exact input width (x block is full-extent along
        # Din, exempt from the 128 rule); later layers match the previous
        # layer's lane-padded output width.  Zero padding keeps results exact.
        d_in_pad = d_in if first else _round_up(d_in, 128)
        w_p = jnp.pad(w, ((0, d_in_pad - d_in), (0, d_out_pad - d_out)))
        w_p = w_p.astype(compute_dtype)
        b_p = jnp.pad(b.reshape(1, d_out), ((0, 0), (0, d_out_pad - d_out)))
        b_p = b_p.astype(jnp.float32)         # epilogue stays f32
        layers.append((w_p, b_p))
        first = False
    return {
        "layers": layers,
        "out_dim": params[-1][0].shape[1],
        "compute_dtype": compute_dtype,
    }


def perceptron_forward(prep, x):
    """Fused forward. prep: output of prepare_params. x: (B, Din) f32."""
    layers = prep["layers"]
    compute_dtype = prep["compute_dtype"]
    d_out = prep["out_dim"]
    n_layers = len(layers)
    B, Din = x.shape
    assert layers[0][0].shape[0] == Din, "input width mismatch with prepared params"
    dout_pad = layers[-1][0].shape[1]

    # ---- batch tiling ------------------------------------------------------
    if B <= 8:
        tm = B                                 # full-extent row block (exempt)
    else:
        # >= 2 grid steps for moderate batches (v7x megacore), up to 512-row
        # tiles for large batches (v5e/v6e HBM-roofline efficiency).
        tm = min(512, _round_up(pl.cdiv(B, 2), 8))
    grid_m = pl.cdiv(B, tm)                    # partial tail block is masked

    # ---- specs ---------------------------------------------------------------
    in_specs = [pl.BlockSpec((tm, Din), lambda i: (i, 0))]
    flat_wb = []
    for (w_p, b_p) in layers:
        # Constant block index -> weights/bias DMA'd once, kept VMEM-resident
        # across all batch tiles.
        in_specs.append(pl.BlockSpec(w_p.shape, lambda i: (0, 0)))
        in_specs.append(pl.BlockSpec(b_p.shape, lambda i: (0, 0)))
        flat_wb.extend([w_p, b_p])
    out_specs = pl.BlockSpec((tm, dout_pad), lambda i: (i, 0))

    # ---- explicit VMEM budget (worst case: everything double-buffered) ------
    w_bytes = sum(w.size * w.dtype.itemsize + b.size * b.dtype.itemsize
                  for (w, b) in layers)
    widest = max([Din] + [w.shape[1] for (w, _) in layers])
    act_bytes = (2 * tm * Din * x.dtype.itemsize       # x tiles
                 + 2 * tm * dout_pad * x.dtype.itemsize  # out tiles
                 + 2 * tm * widest * 4)                   # live f32 intermediates
    needed = 2 * w_bytes + act_bytes
    vmem_limit = int(min(max(needed + (4 << 20), 32 << 20), 64 << 20))
    if needed > vmem_limit:
        # TODO(synk): tiled-weight fallback (K-reduction grid axis or
        # pltpu.emit_pipeline over weight tiles) for layers too large to keep
        # resident in v7x's 64 MiB VMEM.
        raise ValueError(
            f"Fused MLP needs ~{needed >> 20} MiB VMEM; exceeds the resident-"
            f"weights budget ({vmem_limit >> 20} MiB).")

    kernel = functools.partial(_mlp_kernel, num_layers=n_layers,
                               compute_dtype=compute_dtype)

    out_p = pl.pallas_call(
        kernel,
        out_shape=jax.ShapeDtypeStruct((B, dout_pad), x.dtype),
        grid_spec=pltpu.PrefetchScalarGridSpec(
            num_scalar_prefetch=0,
            grid=(grid_m,),
            in_specs=in_specs,
            out_specs=out_specs,
        ),
        compiler_params=pltpu.CompilerParams(
            # Batch tiles are independent -> shard across TCs on v7x megacore.
            dimension_semantics=("parallel",),
            vmem_limit_bytes=vmem_limit,
        ),
    )(x, *flat_wb)

    return out_p[:, :d_out]


def init_perceptron_params(key, input_dim=784, num_layers=0, hidden_dim=64,
                           output_dim=10):
    """Deterministic init mimicking torch.nn.Linear (U(-1/sqrt(fan_in), +)).
    Weights stored as (in, out) so each layer is out = x @ W + b."""
    params = []
    prev = input_dim
    dims = [hidden_dim] * num_layers + [output_dim]
    for d in dims:
        key, kw, kb = jax.random.split(key, 3)
        bound = 1.0 / jnp.sqrt(prev)
        w = jax.random.uniform(kw, (prev, d), jnp.float32, -bound, bound)
        b = jax.random.uniform(kb, (d,), jnp.float32, -bound, bound)
        params.append((w, b))
        prev = d
    return params


if __name__ == "__main__":
    # Shapes matching the module defaults (MNIST-style MLP), small batch.
    batch = 64
    input_dim = 784
    num_layers = 2
    hidden_dim = 64
    output_dim = 10

    key = jax.random.PRNGKey(0)
    key, kx = jax.random.split(key)
    x = jax.random.normal(kx, (batch, input_dim), jnp.float32)

    params = init_perceptron_params(
        key, input_dim=input_dim, num_layers=num_layers,
        hidden_dim=hidden_dim, output_dim=output_dim)

    # Plain-JAX reference of the same forward pass.
    ref = x
    for i, (w, b) in enumerate(params):
        ref = ref @ w + b
        if i < len(params) - 1:
            ref = jnp.maximum(ref, 0.0)

    # ---- exact f32 path ------------------------------------------------------
    prep_f32 = prepare_params(params, compute_dtype=jnp.float32)
    out_f32 = jax.block_until_ready(perceptron_forward(prep_f32, x))
    assert out_f32.shape == (batch, output_dim)
    assert jnp.allclose(out_f32, ref, atol=1e-5, rtol=1e-5), (
        float(jnp.max(jnp.abs(out_f32 - ref))))

    # ---- fast bf16-operand path (f32 accumulation) ---------------------------
    prep_bf16 = prepare_params(params, compute_dtype=jnp.bfloat16)
    out_bf16 = jax.block_until_ready(perceptron_forward(prep_bf16, x))
    assert out_bf16.shape == (batch, output_dim)
    assert jnp.allclose(out_bf16, ref, atol=5e-2, rtol=5e-2), (
        float(jnp.max(jnp.abs(out_bf16 - ref))))

    print("KERNEL_OK")
</pallas_src>

<mosaic_0001>
module attributes {stable_mosaic.version = 11 : i64} {
  func.func @_mlp_kernel(%arg0: i32, %arg1: memref<32x784xf32, #tpu.memory_space<vmem>>, %arg2: memref<784x128xf32, #tpu.memory_space<vmem>>, %arg3: memref<1x128xf32, #tpu.memory_space<vmem>>, %arg4: memref<128x128xf32, #tpu.memory_space<vmem>>, %arg5: memref<1x128xf32, #tpu.memory_space<vmem>>, %arg6: memref<128x128xf32, #tpu.memory_space<vmem>>, %arg7: memref<1x128xf32, #tpu.memory_space<vmem>>, %arg8: memref<32x128xf32, #tpu.memory_space<vmem>>) attributes {dimension_semantics = [#tpu.dimension_semantics<parallel>], iteration_bounds = array<i64: 2>, scalar_prefetch = 0 : i64, scratch_operands = 0 : i64, tpu.core_type = #tpu.core_type<tc>, window_params = [{transform_indices = @transform_0, window_bounds = array<i64: 32, 784>}, {pipeline_mode = #tpu.pipeline_mode<synchronous>, transform_indices = @transform_1, window_bounds = array<i64: 784, 128>}, {pipeline_mode = #tpu.pipeline_mode<synchronous>, transform_indices = @transform_2, window_bounds = array<i64: 1, 128>}, {pipeline_mode = #tpu.pipeline_mode<synchronous>, transform_indices = @transform_3, window_bounds = array<i64: 128, 128>}, {pipeline_mode = #tpu.pipeline_mode<synchronous>, transform_indices = @transform_4, window_bounds = array<i64: 1, 128>}, {pipeline_mode = #tpu.pipeline_mode<synchronous>, transform_indices = @transform_5, window_bounds = array<i64: 128, 128>}, {pipeline_mode = #tpu.pipeline_mode<synchronous>, transform_indices = @transform_6, window_bounds = array<i64: 1, 128>}, {transform_indices = @transform_7, window_bounds = array<i64: 32, 128>}]} {
    %c0 = arith.constant 0 : index
    %c0_0 = arith.constant 0 : index
    %0 = vector.load %arg1[%c0, %c0_0] : memref<32x784xf32, #tpu.memory_space<vmem>>, vector<32x784xf32>
    %c0_1 = arith.constant 0 : index
    %c0_2 = arith.constant 0 : index
    %1 = vector.load %arg2[%c0_1, %c0_2] : memref<784x128xf32, #tpu.memory_space<vmem>>, vector<784x128xf32>
    %c0_3 = arith.constant 0 : index
    %c0_4 = arith.constant 0 : index
    %2 = vector.load %arg3[%c0_3, %c0_4] : memref<1x128xf32, #tpu.memory_space<vmem>>, vector<1x128xf32>
    %cst = arith.constant dense<0.000000e+00> : vector<32x128xf32>
    %3 = tpu.matmul %0, %1, %cst {dimension_numbers = #tpu.dot_dimension_numbers<[1], [0], [0], [1], [0, 0, 1, 1], [], []>} : vector<32x784xf32>, vector<784x128xf32>, vector<32x128xf32> -> vector<32x128xf32>
    %4 = vector.broadcast %2 : vector<1x128xf32> to vector<32x128xf32>
    %5 = arith.addf %3, %4 : vector<32x128xf32>
    %cst_5 = arith.constant 0.000000e+00 : f32
    %6 = vector.broadcast %cst_5 : f32 to vector<32x128xf32>
    %7 = arith.maximumf %5, %6 : vector<32x128xf32>
    %c0_6 = arith.constant 0 : index
    %c0_7 = arith.constant 0 : index
    %8 = vector.load %arg4[%c0_6, %c0_7] : memref<128x128xf32, #tpu.memory_space<vmem>>, vector<128x128xf32>
    %c0_8 = arith.constant 0 : index
    %c0_9 = arith.constant 0 : index
    %9 = vector.load %arg5[%c0_8, %c0_9] : memref<1x128xf32, #tpu.memory_space<vmem>>, vector<1x128xf32>
    %cst_10 = arith.constant dense<0.000000e+00> : vector<32x128xf32>
    %10 = tpu.matmul %7, %8, %cst_10 {dimension_numbers = #tpu.dot_dimension_numbers<[1], [0], [0], [1], [0, 0, 1, 1], [], []>} : vector<32x128xf32>, vector<128x128xf32>, vector<32x128xf32> -> vector<32x128xf32>
    %11 = vector.broadcast %9 : vector<1x128xf32> to vector<32x128xf32>
    %12 = arith.addf %10, %11 : vector<32x128xf32>
    %cst_11 = arith.constant 0.000000e+00 : f32
    %13 = vector.broadcast %cst_11 : f32 to vector<32x128xf32>
    %14 = arith.maximumf %12, %13 : vector<32x128xf32>
    %c0_12 = arith.constant 0 : index
    %c0_13 = arith.constant 0 : index
    %15 = vector.load %arg6[%c0_12, %c0_13] : memref<128x128xf32, #tpu.memory_space<vmem>>, vector<128x128xf32>
    %c0_14 = arith.constant 0 : index
    %c0_15 = arith.constant 0 : index
    %16 = vector.load %arg7[%c0_14, %c0_15] : memref<1x128xf32, #tpu.memory_space<vmem>>, vector<1x128xf32>
    %cst_16 = arith.constant dense<0.000000e+00> : vector<32x128xf32>
    %17 = tpu.matmul %14, %15, %cst_16 {dimension_numbers = #tpu.dot_dimension_numbers<[1], [0], [0], [1], [0, 0, 1, 1], [], []>} : vector<32x128xf32>, vector<128x128xf32>, vector<32x128xf32> -> vector<32x128xf32>
    %18 = vector.broadcast %16 : vector<1x128xf32> to vector<32x128xf32>
    %19 = arith.addf %17, %18 : vector<32x128xf32>
    %c0_17 = arith.constant 0 : index
    %c0_18 = arith.constant 0 : index
    %20 = vector.load %arg8[%c0_17, %c0_18] : memref<32x128xf32, #tpu.memory_space<vmem>>, vector<32x128xf32>
    tpu.vector_store %arg8[%c0_17, %c0_18], %19 {strides = array<i32>} : memref<32x128xf32, #tpu.memory_space<vmem>>, vector<32x128xf32>,
    return
  }
  func.func @transform_0(%arg0: i32) -> (i32, i32) {
    %c0_i32 = arith.constant 0 : i32
    %c0_i32_0 = arith.constant 0 : i32
    return %arg0, %c0_i32 : i32, i32
  }
  func.func @transform_1(%arg0: i32) -> (i32, i32) {
    %c0_i32 = arith.constant 0 : i32
    %c0_i32_0 = arith.constant 0 : i32
    %c0_i32_1 = arith.constant 0 : i32
    return %c0_i32, %c0_i32_0 : i32, i32
  }
  func.func @transform_2(%arg0: i32) -> (i32, i32) {
    %c0_i32 = arith.constant 0 : i32
    %c0_i32_0 = arith.constant 0 : i32
    %c0_i32_1 = arith.constant 0 : i32
    return %c0_i32, %c0_i32_0 : i32, i32
  }
  func.func @transform_3(%arg0: i32) -> (i32, i32) {
    %c0_i32 = arith.constant 0 : i32
    %c0_i32_0 = arith.constant 0 : i32
    %c0_i32_1 = arith.constant 0 : i32
    return %c0_i32, %c0_i32_0 : i32, i32
  }
  func.func @transform_4(%arg0: i32) -> (i32, i32) {
    %c0_i32 = arith.constant 0 : i32
    %c0_i32_0 = arith.constant 0 : i32
    %c0_i32_1 = arith.constant 0 : i32
    return %c0_i32, %c0_i32_0 : i32, i32
  }
  func.func @transform_5(%arg0: i32) -> (i32, i32) {
    %c0_i32 = arith.constant 0 : i32
    %c0_i32_0 = arith.constant 0 : i32
    %c0_i32_1 = arith.constant 0 : i32
    return %c0_i32, %c0_i32_0 : i32, i32
  }
  func.func @transform_6(%arg0: i32) -> (i32, i32) {
    %c0_i32 = arith.constant 0 : i32
    %c0_i32_0 = arith.constant 0 : i32
    %c0_i32_1 = arith.constant 0 : i32
    return %c0_i32, %c0_i32_0 : i32, i32
  }
  func.func @transform_7(%arg0: i32) -> (i32, i32) {
    %c0_i32 = arith.constant 0 : i32
    %c0_i32_0 = arith.constant 0 : i32
    return %arg0, %c0_i32 : i32, i32
  }
}

</mosaic_0001>

<bundles_post_ra>
// kernel: tpu_custom_call.1
= control target key start
LH: loop header
LB: loop body
LE: loop exit
PB: predicated region body
PF: predicated region fallthrough
CT: control target
= control target key end

     0   :  { %s1537_s0 = inlined_call_operand.hbm [shape: f32[64,784], index: 0, kind: input, shape index: {}]   ;;  %s1538_s1 = inlined_call_operand.hbm [shape: f32[784,128], index: 1, kind: input, shape index: {}]   ;;  %s1539_s2 = inlined_call_operand.vmem [shape: f32[1,128], index: 2, kind: input, shape index: {}]   ;;  %s1540_s3 = inlined_call_operand.hbm [shape: f32[128,128], index: 3, kind: input, shape index: {}]   ;;  %s1541_s4 = inlined_call_operand.vmem [shape: f32[1,128], index: 4, kind: input, shape index: {}]   ;;  %s1542_s5 = inlined_call_operand.hbm [shape: f32[128,128], index: 5, kind: input, shape index: {}]   ;;  %s1543_s6 = inlined_call_operand.vmem [shape: f32[1,128], index: 6, kind: input, shape index: {}]   ;;  %s1544_s7 = inlined_call_operand.hbm [shape: f32[64,128], index: 7, kind: output, shape index: {}]  }
   0x1   :  { %1545 = sst [smem:[#allocation15_spill]] %s1538_s1 }
   0x2   :  { %1546 = sst [smem:[#allocation16_spill]] %s1540_s3 }
   0x3   :  { %1547 = sst [smem:[#allocation17_spill]] %s1542_s5 }
   0x4   :  { %12 = vsyncpa [#allocation3], 0 }
   0x5   :  { %14 = vsyncpa [#allocation3 + $0x1], 0 }
   0x6   :  { %15 = vsyncpa [#allocation6], 0 }
   0x7   :  { %16 = vsyncpa [#allocation9], 0 }
   0x8   :  { %17 = vsyncpa [#allocation4], 0 }
   0x9   :  { %19 = vsyncpa [#allocation4 + $0x1], 0  ;;  %s1332_s24 = smov 0   ;;  %s1334_s25 = smov 0  }
   0xa   :  { %s1336_s26 = smov 0   ;;  %s1338_s27 = smov 0  }
   0xb LB: > { %s1353_s28 = sadd.s32 4294967295, %s1281_s27   ;;  %s926_s29 = sadd.s32 4294967294, %s1281_s27   ;;  %s1281_s27 = sphi %s1338_s27, %s1561_s27   ;;  %s1277_s26 = sphi %s1336_s26, %s1560_s26   ;;  %s1273_s25 = sphi %s1334_s25, %s1559_s25   ;;  %s1269_s24 = sphi %s1332_s24, %s1558_s24  }
   0xc   : > { %p45_p0 = scmp.ne.s32.totalorder %s1273_s25, %s1269_s24  ;;  %p46_p1 = scmp.eq.s32.totalorder %s1353_s28, 0 }
   0xd   : > { %p195_p2 = scmp.eq.s32.totalorder %s1353_s28, 1  ;;  %p201_p3 = scmp.eq.s32.totalorder %s926_s29, 1 }
   0xe   : > { %p1362_p4 = por %p46_p1, %p45_p0  ;;  %p927_p5 = scmp.ge.s32.totalorder %s1281_s27, 1 }
   0xf   : > { %p1367_p6 = por %p201_p3, %p45_p0  ;;  %p208_p7 = scmp.lt.s32.totalorder %s1281_s27, 3 }
  0x10   : > { %s1550_s1 = sld [smem:[#allocation15_spill]]  ;;  %s1283_s13 = smov [#allocation5]  }
  0x11   : > { %p1375_p8 = pnand %p927_p5, %p208_p7  ;;  %s221_s14 = sshll.u32 %s1283_s13, 4  ;;  %s222_s14 = int_to_ptr.vmem [resolvable:$true] %s221_s14 }
  0x12   : > { %s1553_s3 = sld [smem:[#allocation16_spill]]  ;;  %s1284_s19 = smov 128  }
  0x13   : > { %p1017_p9 = pneg %p1375_p8  ;;  %s1285_s20 = smov 8  }
  0x14   : > { %s1286_s21 = smov [#allocation7]   ;;  %s1554_s5 = sld [smem:[#allocation17_spill]] }
  0x15   : > { %p1383_p10 = pnand %p1017_p9, %p46_p1  ;;  %s238_s22 = sshll.u32 %s1286_s21, 4  ;;  %s239_s22 = int_to_ptr.vmem [resolvable:$true] %s238_s22 }
  0x16   : > { %s219_s11 = sshll.u32 %s1550_s1, 4  ;;  %s1287_s10 = smov [#allocation8]   ;;  %s220_s11 = int_to_ptr.hbm [resolvable:$true] %s219_s11 }
  0x17   : > { %1020 = dma.hbm_to_vmem [thread:$0]  (!%p1383_p10), %s220_s11, 12544, %s222_s14, [#allocation6], %s1284_s19, %s1284_s19, %s1285_s20  }
  0x18   : > { %s236_s18 = sshll.u32 %s1553_s3, 4  ;;  %s255_s13 = sshll.u32 %s1287_s10, 4  ;;  %s237_s18 = int_to_ptr.hbm [resolvable:$true] %s236_s18  ;;  %s256_s13 = int_to_ptr.vmem [resolvable:$true] %s255_s13 }
  0x19   : > { %1023 = dma.hbm_to_vmem [thread:$0]  (!%p1383_p10), %s237_s18, 2048, %s239_s22, [#allocation6], %s1284_s19, %s1284_s19, %s1285_s20  }
  0x1a   : > { %s253_s9 = sshll.u32 %s1554_s5, 4  ;;  %s1399_s11 = sadd.s32 1, %s1281_s27   ;;  %s254_s9 = int_to_ptr.hbm [resolvable:$true] %s253_s9 }
  0x1b   : > { %1026 = dma.hbm_to_vmem [thread:$0]  (!%p1383_p10), %s254_s9, 2048, %s256_s13, [#allocation9], %s1284_s19, %s1284_s19, %s1285_s20  }
  0x1c   : > { %s29_s14 = ssub.s32 %s1281_s27, %s1399_s11  ;;  %s32_s16 = sadd.s32 1, %s1277_s26 }
  0x1d   : > { %p30_p12 = scmp.eq.s32.totalorder %s29_s14, 0  ;;  %p39_p13 = scmp.ne.s32.totalorder %s1277_s26, %s1273_s25 }
  0x1e   : > { %p40_p0 = scmp.eq.s32.totalorder %s1281_s27, 0  ;;  %p1038_p3 = scmp.lt.s32.totalorder %s1281_s27, 2 }
  0x1f   : > { %s1411_s17 = scalar_select %p30_p12, %s1277_s26, %s32_s16  }
  0x20   : > { %p41_p5 = por %p40_p0, %p39_p13  ;;  %p1415_p7 = por %p195_p2, %p39_p13 }
  0x21   : > { %s272_s21 = sand.u32 1, %s1277_s26   ;;  %s999_s22 = smul.u32 224, %s1281_s27 }
  0x22   : > { %s998_s23 = smul.u32 224, %s272_s21  ;;  %p1424_p9 = pnand %p1038_p3, %p41_p5 }
  0x23   : > { %s282_s19 = scalar_lea.hbm %s1537_s0, %s999_s22  ;;  %s273_s14 = scalar_lea.sflag [#allocation3], %s272_s21 }
  0x24   : > { %s283_s9 = sshll.u32 %s282_s19, 4  ;;  %s276_s10 = scalar_lea.vmem [#allocation2], %s998_s23  ;;  %s284_s9 = int_to_ptr.hbm [resolvable:$true] %s283_s9 }
  0x25   : > { %s285_s13 = sshll.u32 %s276_s10, 4  ;;  %s1177_s16 = sshra.s32 %s284_s9, 4  ;;  %s286_s13 = int_to_ptr.vmem [resolvable:$true] %s285_s13  ;;  %s1178_s16 = int_to_ptr.hbm [resolvable:$true] %s1177_s16 }
  0x26   : > { %s1179_s1 = scalar_lea.hbm %s1178_s16, 224  ;;  %p1181_p10 = pneg %p1424_p9 }
  0x27   : > { %p1180_p2 = scmp.ne.s32.totalorder %s1178_s16, %s1179_s1  ;;  %s1184_s29 = scalar_lea.hbm %s1537_s0, 448 }
  0x28   : > { %p1185_p0 = scmp.lt.s32.totalorder %s1178_s16, %s1537_s0  ;;  %p1186_p3 = scmp.lt.s32.totalorder %s1184_s29, %s1179_s1 }
  0x29   : > { %p1182_p12 = pnand %p1181_p10, %p1180_p2 }
  0x2a   : > { %p1187_p5 = por %p1186_p3, %p1185_p0 }
  0x2b   : > { %p1183_p13 = pneg %p1182_p12 }
  0x2d   : > { %p1188_p11 = pnand %p1187_p5, %p1183_p13 }
  0x2f   : > { %1191 = shalt.err (!%p1188_p11)
}
  0x30   : > { %s1288_s21 = smov 896   ;;  %s1289_s23 = smov 56  }
  0x31   : > { %1030 = dma.hbm_to_vmem [thread:$0]  (!%p1424_p9), %s284_s9, 3584, %s286_s13, %s273_s14, %s1288_s21, %s1288_s21, %s1289_s23  }
  0x32   : > { %297 = sbr.rel (%p1375_p8) target bundleno = 560 (0x230), region = 48  ;;  %s1441_s19 = sand.u32 (!%p1375_p8), 1, %s1273_s25  }
  0x33   : > { %s1000_s3 = smul.u32 (!%p1375_p8), 224, %s1441_s19  ;;  %s300_s5 = scalar_lea.sflag (!%p1375_p8), [#allocation3], %s1441_s19 }
  0x35   : > { %s1445_s1 = scalar_lea.vmem (!%p1375_p8), [#allocation2], %s1000_s3 }
  0x37   : > { %1252 = dma.done.wait (%p1362_p4), %s300_s5, 3584  }
  0x38   : > { %1254 = vsyncadd (%p1362_p4), %s300_s5, 4294963712 }
  0x39   : > { %1256 = dma.done.wait (%p46_p1), [#allocation6], 14592  }
  0x3a   : > { %1258 = vsyncadd (%p46_p1), [#allocation6], 4294952704 }
  0x3b   : > { %1260 = dma.done.wait (%p46_p1), [#allocation9], 2048  }
  0x3c   : > { %1262 = vsyncadd (%p46_p1), [#allocation9], 4294965248  ;;  %v395_v0 = vld [vmem:[#allocation5 + $0x78] sm:$0xff]  ;;  %v394_v2 = vld [vmem:[#allocation5 + $0x70] sm:$0xff]  ;;  %vm482_vm0 = vcmask 130048   ;;  %s939_s10 = sshll.u32 %s1441_s19, 5 }
  0x3d   : > { %v427_v1 = vld [vmem:[#allocation5 + $0x178] sm:$0xff]  ;;  %495 = vmatpush.msra.mxu0 %v395_v0  ;;  %v426_v4 = vld [vmem:[#allocation5 + $0x170] sm:$0xff]  ;;  %v393_v6 = vld [vmem:[#allocation5 + $0x68] sm:$0xff]  ;;  %s349_s16 = scalar_lea.vmem [#allocation10], %s939_s10  ;;  %s949_s22 = sshll.u32 %s1353_s28, 5 }
  0x3e   : > { %553 = vmatpush.msra.mxu2 %v427_v1  ;;  %v411_v3 = vld [vmem:[#allocation5 + $0xf8] sm:$0xff]  ;;  %v410_v7 = vld [vmem:[#allocation5 + $0xf0] sm:$0xff]  ;;  %v425_v8 = vld [vmem:[#allocation5 + $0x168] sm:$0xff]  ;;  %s820_s21 = scalar_lea.hbm %s1544_s7, %s949_s22  ;;  %s821_s23 = sshll.u32 %s349_s16, 4  ;;  %s822_s23 = int_to_ptr.vmem [resolvable:$true] %s821_s23 }
  0x3f   : > { %v443_v5 = vld [vmem:[#allocation5 + $0x1f8] sm:$0xff]  ;;  %524 = vmatpush.msra.mxu1 %v411_v3  ;;  %496 = vmatpush.msra.mxu0 %v394_v2  ;;  %v442_v9 = vld [vmem:[#allocation5 + $0x1f0] sm:$0xff]  ;;  %v409_v10 = vld [vmem:[#allocation5 + $0xe8] sm:$0xff]  ;;  %s823_s3 = sshll.u32 %s820_s21, 4  ;;  %s809_s5 = scalar_lea.sflag [#allocation4], %s1441_s19  ;;  %s824_s3 = int_to_ptr.hbm [resolvable:$true] %s823_s3 }
  0x40   : > { %582 = vmatpush.msra.mxu3 %v443_v5  ;;  %554 = vmatpush.msra.mxu2 %v426_v4  ;;  %v392_v11 = vld [vmem:[#allocation5 + $0x60] sm:$0xff]  ;;  %v441_v13 = vld [vmem:[#allocation5 + $0x1e8] sm:$0xff]  ;;  %v391_v16 = vld [vmem:[#allocation5 + $0x58] sm:$0xff]  ;;  %s1227_s20 = scalar_lea.hbm %s1544_s7, 64 }
  0x41   : > { %525 = vmatpush.msra.mxu1 %v410_v7  ;;  %v424_v12 = vld [vmem:[#allocation5 + $0x160] sm:$0xff]  ;;  %497 = vmatpush.msra.mxu0 %v393_v6  ;;  %v423_v17 = vld [vmem:[#allocation5 + $0x158] sm:$0xff]  ;;  %v390_v20 = vld [vmem:[#allocation5 + $0x50] sm:$0xff] }
  0x42   : > { %583 = vmatpush.msra.mxu3 %v442_v9  ;;  %555 = vmatpush.msra.mxu2 %v425_v8  ;;  %v408_v14 = vld [vmem:[#allocation5 + $0xe0] sm:$0xff]  ;;  %v407_v18 = vld [vmem:[#allocation5 + $0xd8] sm:$0xff]  ;;  %v422_v21 = vld [vmem:[#allocation5 + $0x150] sm:$0xff] }
  0x43   : > { %v440_v15 = vld [vmem:[#allocation5 + $0x1e0] sm:$0xff]  ;;  %526 = vmatpush.msra.mxu1 %v409_v10  ;;  %498 = vmatpush.msra.mxu0 %v392_v11  ;;  %v439_v19 = vld [vmem:[#allocation5 + $0x1d8] sm:$0xff]  ;;  %v406_v22 = vld [vmem:[#allocation5 + $0xd0] sm:$0xff] }
  0x44   : > { %584 = vmatpush.msra.mxu3 %v441_v13  ;;  %556 = vmatpush.msra.mxu2 %v424_v12  ;;  %v438_v23 = vld [vmem:[#allocation5 + $0x1d0] sm:$0xff]  ;;  %v389_v24 = vld [vmem:[#allocation5 + $0x48] sm:$0xff]  ;;  %v388_v28 = vld [vmem:[#allocation5 + $0x40] sm:$0xff] }
  0x45   : > { %527 = vmatpush.msra.mxu1 %v408_v14  ;;  %499 = vmatpush.msra.mxu0 %v391_v16  ;;  %v421_v25 = vld [vmem:[#allocation5 + $0x148] sm:$0xff]  ;;  %v420_v29 = vld [vmem:[#allocation5 + $0x140] sm:$0xff]  ;;  %v387_v32 = vld [vmem:[#allocation5 + $0x38] sm:$0xff] }
  0x46   : > { %585 = vmatpush.msra.mxu3 %v440_v15  ;;  %557 = vmatpush.msra.mxu2 %v423_v17  ;;  %v405_v26 = vld [vmem:[#allocation5 + $0xc8] sm:$0xff]  ;;  %v404_v30 = vld [vmem:[#allocation5 + $0xc0] sm:$0xff]  ;;  %v419_v33 = vld [vmem:[#allocation5 + $0x138] sm:$0xff] }
  0x47   : > { %528 = vmatpush.msra.mxu1 %v407_v18  ;;  %500 = vmatpush.msra.mxu0 %v390_v20  ;;  %v437_v27 = vld [vmem:[#allocation5 + $0x1c8] sm:$0xff]  ;;  %v436_v31 = vld [vmem:[#allocation5 + $0x1c0] sm:$0xff]  ;;  %v403_v34 = vld [vmem:[#allocation5 + $0xb8] sm:$0xff] }
  0x48   : > { %586 = vmatpush.msra.mxu3 %v439_v19  ;;  %558 = vmatpush.msra.mxu2 %v422_v21  ;;  %v435_v35 = vld [vmem:[#allocation5 + $0x1b8] sm:$0xff]  ;;  %v386_v36 = vld [vmem:[#allocation5 + $0x30] sm:$0xff]  ;;  %v385_v40 = vld [vmem:[#allocation5 + $0x28] sm:$0xff] }
  0x49   : > { %529 = vmatpush.msra.mxu1 %v406_v22  ;;  %501 = vmatpush.msra.mxu0 %v389_v24  ;;  %v418_v37 = vld [vmem:[#allocation5 + $0x130] sm:$0xff]  ;;  %v417_v41 = vld [vmem:[#allocation5 + $0x128] sm:$0xff]  ;;  %v384_v44 = vld [vmem:[#allocation5 + $0x20] sm:$0xff] }
  0x4a   : > { %587 = vmatpush.msra.mxu3 %v438_v23  ;;  %559 = vmatpush.msra.mxu2 %v421_v25  ;;  %v402_v38 = vld [vmem:[#allocation5 + $0xb0] sm:$0xff]  ;;  %v401_v42 = vld [vmem:[#allocation5 + $0xa8] sm:$0xff]  ;;  %v416_v45 = vld [vmem:[#allocation5 + $0x120] sm:$0xff] }
  0x4b   : > { %530 = vmatpush.msra.mxu1 %v405_v26  ;;  %502 = vmatpush.msra.mxu0 %v388_v28  ;;  %v434_v39 = vld [vmem:[#allocation5 + $0x1b0] sm:$0xff]  ;;  %v433_v43 = vld [vmem:[#allocation5 + $0x1a8] sm:$0xff]  ;;  %v400_v46 = vld [vmem:[#allocation5 + $0xa0] sm:$0xff] }
  0x4c   : > { %588 = vmatpush.msra.mxu3 %v437_v27  ;;  %560 = vmatpush.msra.mxu2 %v420_v29  ;;  %v432_v47 = vld [vmem:[#allocation5 + $0x1a0] sm:$0xff]  ;;  %v383_v48 = vld [vmem:[#allocation5 + $0x18] sm:$0xff]  ;;  %v382_v52 = vld [vmem:[#allocation5 + $0x10] sm:$0xff] }
  0x4d   : > { %531 = vmatpush.msra.mxu1 %v404_v30  ;;  %503 = vmatpush.msra.mxu0 %v387_v32  ;;  %v415_v49 = vld [vmem:[#allocation5 + $0x118] sm:$0xff]  ;;  %v414_v53 = vld [vmem:[#allocation5 + $0x110] sm:$0xff]  ;;  %v381_v56 = vld [vmem:[#allocation5 + $0x8] sm:$0xff] }
  0x4e   : > { %589 = vmatpush.msra.mxu3 %v436_v31  ;;  %561 = vmatpush.msra.mxu2 %v419_v33  ;;  %v399_v50 = vld [vmem:[#allocation5 + $0x98] sm:$0xff]  ;;  %v398_v54 = vld [vmem:[#allocation5 + $0x90] sm:$0xff]  ;;  %v413_v57 = vld [vmem:[#allocation5 + $0x108] sm:$0xff] }
  0x4f   : > { %532 = vmatpush.msra.mxu1 %v403_v34  ;;  %504 = vmatpush.msra.mxu0 %v386_v36  ;;  %v431_v51 = vld [vmem:[#allocation5 + $0x198] sm:$0xff]  ;;  %v430_v55 = vld [vmem:[#allocation5 + $0x190] sm:$0xff]  ;;  %v397_v58 = vld [vmem:[#allocation5 + $0x88] sm:$0xff] }
  0x50   : > { %590 = vmatpush.msra.mxu3 %v435_v35  ;;  %562 = vmatpush.msra.mxu2 %v418_v37  ;;  %v429_v59 = vld [vmem:[#allocation5 + $0x188] sm:$0xff]  ;;  %v380_v60 = vld [vmem:[#allocation5] sm:$0xff]  ;;  %v354_v63 = vld [vmem:[%s1445_s1 + $0x10] sm:$0xff] }
  0x51   : > { %533 = vmatpush.msra.mxu1 %v402_v38  ;;  %505 = vmatpush.msra.mxu0 %v385_v40  ;;  %v412_v61 = vld [vmem:[#allocation5 + $0x100] sm:$0xff]  ;;  %v477_v0 = vld [vmem:[#allocation5 + $0x308] sm:$0xff]  ;;  %v459_v3 = vld [vmem:[#allocation5 + $0x278] sm:$0xff] }
  0x52   : > { %591 = vmatpush.msra.mxu3 %v434_v39  ;;  %563 = vmatpush.msra.mxu2 %v417_v41  ;;  %v352_v62 = vld [vmem:[%s1445_s1] sm:$0xff]  ;;  %v353_v4 = vld [vmem:[%s1445_s1 + $0x8] sm:$0xff]  ;;  %v355_v5 = vld [vmem:[%s1445_s1 + $0x18] sm:$0xff] }
  0x53   : > { %534 = vmatpush.msra.mxu1 %v401_v42  ;;  %506 = vmatpush.msra.mxu0 %v384_v44  ;;  %v396_v1 = vld [vmem:[#allocation5 + $0x80] sm:$0xff]  ;;  %v458_v6 = vld [vmem:[#allocation5 + $0x270] sm:$0xff]  ;;  %v475_v7 = vld [vmem:[#allocation5 + $0x2f8] sm:$0xff] }
  0x54   : > { %592 = vmatpush.msra.mxu3 %v433_v43  ;;  %564 = vmatpush.msra.mxu2 %v416_v45  ;;  %v428_v2 = vld [vmem:[#allocation5 + $0x180] sm:$0xff]  ;;  %v457_v9 = vld [vmem:[#allocation5 + $0x268] sm:$0xff]  ;;  %v474_v10 = vld [vmem:[#allocation5 + $0x2f0] sm:$0xff] }
  0x55   : > { %535 = vmatpush.msra.mxu1 %v400_v46  ;;  %507 = vmatpush.msra.mxu0 %v383_v48  ;;  %v476_v8 = vld [vmem:[#allocation5 + $0x300] sm:$0xff]  ;;  %v473_v12 = vld [vmem:[#allocation5 + $0x2e8] sm:$0xff]  ;;  %v359_v13 = vld [vmem:[%s1445_s1 + $0x38] sm:$0xff] }
  0x56   : > { %593 = vmatpush.msra.mxu3 %v432_v47  ;;  %565 = vmatpush.msra.mxu2 %v415_v49  ;;  %v456_v11 = vld [vmem:[#allocation5 + $0x260] sm:$0xff]  ;;  %v361_v14 = vld [vmem:[%s1445_s1 + $0x48] sm:$0xff]  ;;  %v455_v15 = vld [vmem:[#allocation5 + $0x258] sm:$0xff] }
  0x57   : > { %536 = vmatpush.msra.mxu1 %v399_v50  ;;  %508 = vmatpush.msra.mxu0 %v382_v52  ;;  %v472_v16 = vld [vmem:[#allocation5 + $0x2e0] sm:$0xff]  ;;  %v362_v18 = vld [vmem:[%s1445_s1 + $0x50] sm:$0xff]  ;;  %v471_v20 = vld [vmem:[#allocation5 + $0x2d8] sm:$0xff] }
  0x58   : > { %594 = vmatpush.msra.mxu3 %v431_v51  ;;  %566 = vmatpush.msra.mxu2 %v414_v53  ;;  %v360_v17 = vld [vmem:[%s1445_s1 + $0x40] sm:$0xff]  ;;  %v454_v19 = vld [vmem:[#allocation5 + $0x250] sm:$0xff]  ;;  %v453_v21 = vld [vmem:[#allocation5 + $0x248] sm:$0xff] }
  0x59   : > { %537 = vmatpush.msra.mxu1 %v398_v54  ;;  %509 = vmatpush.msra.mxu0 %v381_v56  ;;  %v470_v22 = vld [vmem:[#allocation5 + $0x2d0] sm:$0xff]  ;;  %v452_v23 = vld [vmem:[#allocation5 + $0x240] sm:$0xff]  ;;  %v469_v24 = vld [vmem:[#allocation5 + $0x2c8] sm:$0xff] }
  0x5a   : > { %595 = vmatpush.msra.mxu3 %v430_v55  ;;  %567 = vmatpush.msra.mxu2 %v413_v57  ;;  %v366_v25 = vld [vmem:[%s1445_s1 + $0x70] sm:$0xff]  ;;  %v368_v26 = vld [vmem:[%s1445_s1 + $0x80] sm:$0xff]  ;;  %v451_v27 = vld [vmem:[#allocation5 + $0x238] sm:$0xff] }
  0x5b   : > { %538 = vmatpush.msra.mxu1 %v397_v58  ;;  %510 = vmatpush.msra.mxu0 %v380_v60  ;;  %v468_v28 = vld [vmem:[#allocation5 + $0x2c0] sm:$0xff]  ;;  %v367_v29 = vld [vmem:[%s1445_s1 + $0x78] sm:$0xff]  ;;  %v369_v30 = vld [vmem:[%s1445_s1 + $0x88] sm:$0xff] }
  0x5c   : > { %596 = vmatpush.msra.mxu3 %v429_v59  ;;  %568 = vmatpush.msra.mxu2 %v412_v61  ;;  %v450_v31 = vld [vmem:[#allocation5 + $0x230] sm:$0xff]  ;;  %v467_v32 = vld [vmem:[#allocation5 + $0x2b8] sm:$0xff]  ;;  %v449_v33 = vld [vmem:[#allocation5 + $0x228] sm:$0xff] }
  0x5d   : > { %511 = vmatmul.f32.vlgmr.msra.gmra.mxu0 %v352_v62  ;;  %569 = vmatmul.f32.vlgmr.msra.gmra.mxu2 %v354_v63  ;;  %v466_v34 = vld [vmem:[#allocation5 + $0x2b0] sm:$0xff]  ;;  %v448_v35 = vld [vmem:[#allocation5 + $0x220] sm:$0xff]  ;;  %v465_v36 = vld [vmem:[#allocation5 + $0x2a8] sm:$0xff] }
  0x5e   : > { %683 = vmatpush.msrb.mxu2 %v477_v0  ;;  %539 = vmatpush.msra.mxu1 %v396_v1  ;;  %v373_v37 = vld [vmem:[%s1445_s1 + $0xa8] sm:$0xff]  ;;  %v375_v38 = vld [vmem:[%s1445_s1 + $0xb8] sm:$0xff]  ;;  %v464_v40 = vld [vmem:[#allocation5 + $0x2a0] sm:$0xff] }
  0x5f   : > { %597 = vmatpush.msra.mxu3 %v428_v2  ;;  %611 = vmatpush.msrb.mxu0 %v459_v3  ;;  %v447_v39 = vld [vmem:[#allocation5 + $0x218] sm:$0xff]  ;;  %v374_v41 = vld [vmem:[%s1445_s1 + $0xb0] sm:$0xff]  ;;  %v376_v42 = vld [vmem:[%s1445_s1 + $0xc0] sm:$0xff] }
  0x60   : > { %540 = vmatmul.f32.vlgmr.msra.gmra.mxu1 %v353_v4  ;;  %598 = vmatmul.f32.vlgmr.msra.gmra.mxu3 %v355_v5  ;;  %v446_v43 = vld [vmem:[#allocation5 + $0x210] sm:$0xff]  ;;  %v463_v44 = vld [vmem:[#allocation5 + $0x298] sm:$0xff]  ;;  %v445_v45 = vld [vmem:[#allocation5 + $0x208] sm:$0xff] }
  0x61   : > { %612 = vmatpush.msrb.mxu0 %v458_v6  ;;  %640 = vmatpush.msrb.mxu1 %v475_v7  ;;  %v462_v46 = vld [vmem:[#allocation5 + $0x290] sm:$0xff]  ;;  %v444_v47 = vld [vmem:[#allocation5 + $0x200] sm:$0xff]  ;;  %v461_v48 = vld [vmem:[#allocation5 + $0x288] sm:$0xff] }
  0x62   : > { %684 = vmatpush.msrb.mxu2 %v476_v8  ;;  %v356_v49 = vld [vmem:[%s1445_s1 + $0x20] sm:$0xff]  ;;  %v358_v50 = vld [vmem:[%s1445_s1 + $0x30] sm:$0xff]  ;;  %v357_v52 = vld [vmem:[%s1445_s1 + $0x28] sm:$0xff] }
  0x63   : > { %613 = vmatpush.msrb.mxu0 %v457_v9  ;;  %641 = vmatpush.msrb.mxu1 %v474_v10  ;;  %v460_v51 = vld [vmem:[#allocation5 + $0x280] sm:$0xff]  ;;  %v363_v53 = vld [vmem:[%s1445_s1 + $0x58] sm:$0xff]  ;;  %v365_v54 = vld [vmem:[%s1445_s1 + $0x68] sm:$0xff] }
  0x64   : > { %v364_v55 = vld [vmem:[%s1445_s1 + $0x60] sm:$0xff]  ;;  %v370_v56 = vld [vmem:[%s1445_s1 + $0x90] sm:$0xff]  ;;  %v371_v58 = vld [vmem:[%s1445_s1 + $0x98] sm:$0xff] }
  0x65   : > { %614 = vmatpush.msrb.mxu0 %v456_v11  ;;  %642 = vmatpush.msrb.mxu1 %v473_v12  ;;  %v372_v57 = vld [vmem:[%s1445_s1 + $0xa0] sm:$0xff]  ;;  %v377_v59 = vld [vmem:[%s1445_s1 + $0xc8] sm:$0xff]  ;;  %v379_v60 = vld [vmem:[%s1445_s1 + $0xd8] sm:$0xff] }
  0x66   : > { %514 = vmatmul.f32.gmra.mxu0 %v359_v13  ;;  %572 = vmatmul.f32.gmra.mxu2 %v361_v14  ;;  %v378_v61 = vld [vmem:[%s1445_s1 + $0xd0] sm:$0xff]  ;;  %v717_v62 = vld [vmem:[#allocation7 + $0x78] sm:$0xff]  ;;  %v716_v63 = vld [vmem:[#allocation7 + $0x70] sm:$0xff]  ;;  %s1221_s1 = sshra.s32 %s824_s3, 4  ;;  %s1222_s1 = int_to_ptr.hbm [resolvable:$true] %s1221_s1 }
  0x67   : > { %615 = vmatpush.msrb.mxu0 %v455_v15  ;;  %643 = vmatpush.msrb.mxu1 %v472_v16  ;;  %v715_v0 = vld [vmem:[#allocation7 + $0x68] sm:$0xff]  ;;  %v714_v1 = vld [vmem:[#allocation7 + $0x60] sm:$0xff]  ;;  %v713_v2 = vld [vmem:[#allocation7 + $0x58] sm:$0xff]  ;;  %s1223_s30 = scalar_lea.hbm %s1222_s1, 32  ;;  %p1228_p11 = scmp.lt.s32.totalorder %s1222_s1, %s1544_s7 }
  0x68   : > { %543 = vmatmul.f32.gmra.mxu1 %v360_v17  ;;  %601 = vmatmul.f32.gmra.mxu3 %v362_v18  ;;  %v712_v3 = vld [vmem:[#allocation7 + $0x50] sm:$0xff]  ;;  %v711_v4 = vld [vmem:[#allocation7 + $0x48] sm:$0xff]  ;;  %v710_v5 = vld [vmem:[#allocation7 + $0x40] sm:$0xff]  ;;  %p1224_p1 = scmp.ne.s32.totalorder %s1222_s1, %s1223_s30  ;;  %p1229_p9 = scmp.lt.s32.totalorder %s1227_s20, %s1223_s30 }
  0x69   : > { %616 = vmatpush.msrb.mxu0 %v454_v19  ;;  %644 = vmatpush.msrb.mxu1 %v471_v20  ;;  %v709_v6 = vld [vmem:[#allocation7 + $0x38] sm:$0xff]  ;;  %v708_v7 = vld [vmem:[#allocation7 + $0x30] sm:$0xff]  ;;  %v707_v9 = vld [vmem:[#allocation7 + $0x28] sm:$0xff] }
  0x6a   : > { %722 = vmatpush.msrb.mxu3 %v717_v62  ;;  %v706_v10 = vld [vmem:[#allocation7 + $0x20] sm:$0xff]  ;;  %v705_v12 = vld [vmem:[#allocation7 + $0x18] sm:$0xff]  ;;  %v704_v13 = vld [vmem:[#allocation7 + $0x10] sm:$0xff]  ;;  %p1225_p4 = pnand %p1224_p1, %p1415_p7  ;;  %p1230_p2 = por %p1229_p9, %p1228_p11 }
  0x6b   : > { %617 = vmatpush.msrb.mxu0 %v453_v21  ;;  %645 = vmatpush.msrb.mxu1 %v470_v22  ;;  %v703_v15 = vld [vmem:[#allocation7 + $0x8] sm:$0xff]  ;;  %v702_v17 = vld [vmem:[#allocation7] sm:$0xff]  ;;  %v1084_v20 = vld [vmem:[%s1539_s2] ss:$0 sm:$0xff] }
  0x6c   : > { %723 = vmatpush.msrb.mxu3 %v716_v63  ;;  %p1226_p8 = pneg %p1225_p4 }
  0x6d   : > { %618 = vmatpush.msrb.mxu0 %v452_v23  ;;  %646 = vmatpush.msrb.mxu1 %v469_v24 }
  0x6e   : > { %517 = vmatmul.f32.gmra.mxu0 %v366_v25  ;;  %575 = vmatmul.f32.gmra.mxu2 %v368_v26  ;;  %p1231_p10 = pnand %p1230_p2, %p1226_p8 }
  0x6f   : > { %619 = vmatpush.msrb.mxu0 %v451_v27  ;;  %647 = vmatpush.msrb.mxu1 %v468_v28 }
  0x70   : > { %546 = vmatmul.f32.gmra.mxu1 %v367_v29  ;;  %604 = vmatmul.f32.gmra.mxu3 %v369_v30 }
  0x71   : > { %620 = vmatpush.msrb.mxu0 %v450_v31  ;;  %648 = vmatpush.msrb.mxu1 %v467_v32 }
  0x72   : > { %724 = vmatpush.msrb.mxu3 %v715_v0  ;;  %v763_v0 = vld [vmem:[#allocation8 + $0x40] sm:$0xff] }
  0x73   : > { %621 = vmatpush.msrb.mxu0 %v449_v33  ;;  %649 = vmatpush.msrb.mxu1 %v466_v34 }
  0x74   : > { %725 = vmatpush.msrb.mxu3 %v714_v1 }
  0x75   : > { %622 = vmatpush.msrb.mxu0 %v448_v35  ;;  %650 = vmatpush.msrb.mxu1 %v465_v36 }
  0x76   : > { %520 = vmatmul.f32.gmra.mxu0 %v373_v37  ;;  %578 = vmatmul.f32.gmra.mxu2 %v375_v38 }
  0x77   : > { %623 = vmatpush.msrb.mxu0 %v447_v39  ;;  %651 = vmatpush.msrb.mxu1 %v464_v40  ;;  %v770_v40 = vld [vmem:[#allocation8 + $0x78] sm:$0xff] }
  0x78   : > { %549 = vmatmul.f32.gmra.mxu1 %v374_v41  ;;  %607 = vmatmul.f32.gmra.mxu3 %v376_v42  ;;  %v769_v41 = vld [vmem:[#allocation8 + $0x70] sm:$0xff] }
  0x79   : > { %624 = vmatpush.msrb.mxu0 %v446_v43  ;;  %652 = vmatpush.msrb.mxu1 %v463_v44  ;;  %v768_v43 = vld [vmem:[#allocation8 + $0x68] sm:$0xff] }
  0x7a   : > { %726 = vmatpush.msrb.mxu3 %v713_v2  ;;  %951 = vmatpush.msra.mxu2 %v770_v40 }
  0x7b   : > { %625 = vmatpush.msrb.mxu0 %v445_v45  ;;  %653 = vmatpush.msrb.mxu1 %v462_v46 }
  0x7c   : > { %727 = vmatpush.msrb.mxu3 %v712_v3  ;;  %954 = vmatpush.msra.mxu2 %v769_v41 }
  0x7d   : > { %626 = vmatpush.msrb.mxu0 %v444_v47  ;;  %654 = vmatpush.msrb.mxu1 %v461_v48  ;;  %v767_v48 = vld [vmem:[#allocation8 + $0x60] sm:$0xff] }
  0x7e   : > { %627 = vmatmul.f32.vlgmr.msrb.gmra.mxu0 %v356_v49  ;;  %940 = vmatmul.msk.f32.vlgmr.msrb.gmra.mxu2 %vm482_vm0, %v358_v50 }
  0x7f   : > { %655 = vmatpush.msrb.mxu1 %v460_v51  ;;  %728 = vmatpush.msrb.mxu3 %v711_v4  ;;  %v762_v4 = vld [vmem:[#allocation8 + $0x38] sm:$0xff] }
  0x80   : > { %656 = vmatmul.f32.vlgmr.msrb.gmra.mxu1 %v357_v52  ;;  %775 = vmatpush.msra.mxu0 %v770_v40  ;;  %v766_v52 = vld [vmem:[#allocation8 + $0x58] sm:$0xff] }
  0x81   : > { %729 = vmatpush.msrb.mxu3 %v710_v5  ;;  %950 = vmatpush.msra.mxu1 %v770_v40 }
  0x82   : > { %776 = vmatpush.msra.mxu0 %v769_v41  ;;  %957 = vmatpush.msra.mxu2 %v768_v43 }
  0x83   : > { %730 = vmatpush.msrb.mxu3 %v709_v6  ;;  %953 = vmatpush.msra.mxu1 %v769_v41 }
  0x84   : > { %777 = vmatpush.msra.mxu0 %v768_v43  ;;  %960 = vmatpush.msra.mxu2 %v767_v48 }
  0x85   : > { %731 = vmatpush.msrb.mxu3 %v708_v7  ;;  %956 = vmatpush.msra.mxu1 %v768_v43  ;;  %v761_v7 = vld [vmem:[#allocation8 + $0x30] sm:$0xff] }
  0x86   : > { %630 = vmatmul.f32.gmra.mxu0 %v363_v53  ;;  %941 = vmatmul.msk.f32.gmra.mxu2 %vm482_vm0, %v365_v54 }
  0x87   : > { %732 = vmatpush.msrb.mxu3 %v707_v9  ;;  %778 = vmatpush.msra.mxu0 %v767_v48 }
  0x88   : > { %659 = vmatmul.f32.gmra.mxu1 %v364_v55  ;;  %963 = vmatpush.msra.mxu2 %v766_v52 }
  0x89   : > { %733 = vmatpush.msrb.mxu3 %v706_v10  ;;  %959 = vmatpush.msra.mxu1 %v767_v48  ;;  %v760_v10 = vld [vmem:[#allocation8 + $0x28] sm:$0xff] }
  0x8a   : > { %779 = vmatpush.msra.mxu0 %v766_v52 }
  0x8b   : > { %734 = vmatpush.msrb.mxu3 %v705_v12  ;;  %962 = vmatpush.msra.mxu1 %v766_v52 }
  0x8d   : > { %735 = vmatpush.msrb.mxu3 %v704_v13 }
  0x8e   : > { %633 = vmatmul.f32.gmra.mxu0 %v370_v56  ;;  %942 = vmatmul.msk.f32.gmra.mxu2 %vm482_vm0, %v372_v57  ;;  %v765_v57 = vld [vmem:[#allocation8 + $0x50] sm:$0xff] }
  0x8f   : > { %736 = vmatpush.msrb.mxu3 %v703_v15  ;;  %780 = vmatpush.msra.mxu0 %v765_v57 }
  0x90   : > { %662 = vmatmul.f32.gmra.mxu1 %v371_v58  ;;  %966 = vmatpush.msra.mxu2 %v765_v57 }
  0x91   : > { %737 = vmatpush.msrb.mxu3 %v702_v17  ;;  %965 = vmatpush.msra.mxu1 %v765_v57 }
  0x93   : > { %952 = vmatpush.msra.mxu3 %v770_v40  ;;  %v1086_v40 = vld [vmem:[%s1543_s6] ss:$0 sm:$0xff] }
  0x95   : > { %955 = vmatpush.msra.mxu3 %v769_v41 }
  0x96   : > { %636 = vmatmul.f32.gmra.mxu0 %v377_v59  ;;  %943 = vmatmul.msk.f32.gmra.mxu2 %vm482_vm0, %v379_v60  ;;  %v764_v59 = vld [vmem:[#allocation8 + $0x48] sm:$0xff] }
  0x97   : > { %958 = vmatpush.msra.mxu3 %v768_v43  ;;  %781 = vmatpush.msra.mxu0 %v764_v59 }
  0x98   : > { %665 = vmatmul.f32.gmra.mxu1 %v378_v61  ;;  %969 = vmatpush.msra.mxu2 %v764_v59 }
  0x99   : > { %961 = vmatpush.msra.mxu3 %v767_v48  ;;  %968 = vmatpush.msra.mxu1 %v764_v59 }
  0x9a   : > { %782 = vmatpush.msra.mxu0 %v763_v0  ;;  %972 = vmatpush.msra.mxu2 %v763_v0 }
  0x9b   : > { %964 = vmatpush.msra.mxu3 %v766_v52  ;;  %971 = vmatpush.msra.mxu1 %v763_v0 }
  0x9c   : > { %783 = vmatpush.msra.mxu0 %v762_v4  ;;  %975 = vmatpush.msra.mxu2 %v762_v4 }
  0x9d   : > { %967 = vmatpush.msra.mxu3 %v765_v57  ;;  %974 = vmatpush.msra.mxu1 %v762_v4 }
  0x9e   : > { %784 = vmatpush.msra.mxu0 %v761_v7  ;;  %978 = vmatpush.msra.mxu2 %v761_v7 }
  0x9f   : > { %970 = vmatpush.msra.mxu3 %v764_v59  ;;  %977 = vmatpush.msra.mxu1 %v761_v7 }
  0xa0   : > { %785 = vmatpush.msra.mxu0 %v760_v10  ;;  %981 = vmatpush.msra.mxu2 %v760_v10 }
  0xa1   : > { %973 = vmatpush.msra.mxu3 %v763_v0  ;;  %980 = vmatpush.msra.mxu1 %v760_v10 }
  0xa3   : > { %976 = vmatpush.msra.mxu3 %v762_v4 }
  0xa5   : > { %979 = vmatpush.msra.mxu3 %v761_v7 }
  0xa7   : > { %982 = vmatpush.msra.mxu3 %v760_v10 }
  0xda   : > { %v512_v8 = vpop.f32.mrf.mxu0 }
  0xdb   : > { %v513_v23 = vadd.f32 %v1084_v20, %v512_v8 }
  0xdd   : > { %v541_v11 = vpop.f32.mrf.mxu1 }
  0xde   : > { %v542_v26 = vadd.f32 %v541_v11, %v513_v23 }
  0xe0   : > { %v570_v14 = vpop.f32.mrf.mxu2 }
  0xe1   : > { %v571_v29 = vadd.f32 %v570_v14, %v542_v26  ;;  %v759_v14 = vld [vmem:[#allocation8 + $0x20] sm:$0xff] }
  0xe2   : > { %786 = vmatpush.msra.mxu0 %v759_v14  ;;  %983 = vmatpush.msra.mxu1 %v759_v14  ;;  %v755_v26 = vld [vmem:[#allocation8] sm:$0xff] }
  0xe3   : > { %v515_v16 = vpop.f32.mrf.mxu0  ;;  %v599_v24 = vpop.f32.mrf.mxu3  ;;  %984 = vmatpush.msra.mxu2 %v759_v14  ;;  %985 = vmatpush.msra.mxu3 %v759_v14 }
  0xe4   : > { %v516_v30 = vadd.f32 %v1084_v20, %v515_v16  ;;  %v600_v32 = vadd.f32 %v599_v24, %v571_v29  ;;  %v757_v24 = vld [vmem:[#allocation8 + $0x10] sm:$0xff] }
  0xe5   : > { %v544_v18 = vpop.f32.mrf.mxu1 }
  0xe6   : > { %v545_v33 = vadd.f32 %v544_v18, %v516_v30  ;;  %v758_v18 = vld [vmem:[#allocation8 + $0x18] sm:$0xff] }
  0xe7   : > { %787 = vmatpush.msra.mxu0 %v758_v18  ;;  %986 = vmatpush.msra.mxu1 %v758_v18 }
  0xe8   : > { %987 = vmatpush.msra.mxu2 %v758_v18  ;;  %988 = vmatpush.msra.mxu3 %v758_v18 }
  0xe9   : > { %v573_v19 = vpop.f32.mrf.mxu2  ;;  %788 = vmatpush.msra.mxu0 %v757_v24  ;;  %989 = vmatpush.msra.mxu1 %v757_v24 }
  0xea   : > { %v574_v38 = vadd.f32 %v573_v19, %v545_v33  ;;  %990 = vmatpush.msra.mxu2 %v757_v24  ;;  %991 = vmatpush.msra.mxu3 %v757_v24 }
  0xeb   : > { %v518_v21 = vpop.f32.mrf.mxu0  ;;  %v602_v34 = vpop.f32.mrf.mxu3 }
  0xec   : > { %v519_v39 = vadd.f32 %v1084_v20, %v518_v21  ;;  %v603_v45 = vadd.f32 %v602_v34, %v574_v38 }
  0xed   : > { %v547_v22 = vpop.f32.mrf.mxu1 }
  0xee   : > { %v548_v46 = vadd.f32 %v547_v22, %v519_v39 }
  0xf1   : > { %v576_v25 = vpop.f32.mrf.mxu2 }
  0xf2   : > { %v577_v55 = vadd.f32 %v576_v25, %v548_v46  ;;  %v756_v25 = vld [vmem:[#allocation8 + $0x8] sm:$0xff] }
  0xf3   : > { %v521_v27 = vpop.f32.mrf.mxu0  ;;  %v605_v53 = vpop.f32.mrf.mxu3  ;;  %789 = vmatpush.msra.mxu0 %v756_v25  ;;  %992 = vmatpush.msra.mxu1 %v756_v25 }
  0xf4   : > { %v522_v56 = vadd.f32 %v1084_v20, %v521_v27  ;;  %v606_v61 = vadd.f32 %v605_v53, %v577_v55  ;;  %993 = vmatpush.msra.mxu2 %v756_v25  ;;  %994 = vmatpush.msra.mxu3 %v756_v25  ;;  %v1085_v27 = vld [vmem:[%s1541_s4] ss:$0 sm:$0xff] }
  0xf5   : > { %v550_v28 = vpop.f32.mrf.mxu1  ;;  %790 = vmatpush.msra.mxu0 %v755_v26  ;;  %995 = vmatpush.msra.mxu1 %v755_v26 }
  0xf6   : > { %v551_v62 = vadd.f32 %v550_v28, %v522_v56  ;;  %996 = vmatpush.msra.mxu2 %v755_v26  ;;  %997 = vmatpush.msra.mxu3 %v755_v26 }
  0xf9   : > { %v1494_v31 = vpop.f32.mrf.mxu2 }
  0xfa   : > { %v580_v6 = vadd.f32 %v1494_v31, %v551_v62 }
  0xfb   : > { %v628_v35 = vpop.f32.mrf.mxu0  ;;  %v608_v8 = vpop.f32.mrf.mxu3 }
  0xfc   : > { %v629_v36 = vadd.f32 %v628_v35, %v600_v32  ;;  %v609_v12 = vadd.f32 %v608_v8, %v580_v6 }
  0xfd   : > { %v657_v37 = vpop.f32.mrf.mxu1 }
  0xfe   : > { %v658_v42 = vadd.f32 %v657_v37, %v629_v36 }
 0x101   : > { %v686_v44 = vpop.f32.mrf.mxu2 }
 0x102   : > { %v687_v47 = vadd.f32 %v686_v44, %v658_v42 }
 0x103   : > { %v631_v49 = vpop.f32.mrf.mxu0 }
 0x104   : > { %v698_v50 = vmax.f32 %v687_v47, 0.0  ;;  %v632_v51 = vadd.f32 %v631_v49, %v603_v45 }
 0x105   : > { %v660_v54 = vpop.f32.mrf.mxu1 }
 0x106   : > { %738 = vmatmul.f32.vlgmr.msrb.gmra.mxu3 %v698_v50  ;;  %v661_v58 = vadd.f32 %v660_v54, %v632_v51 }
 0x109   : > { %v689_v60 = vpop.f32.mrf.mxu2 }
 0x10a   : > { %v690_v63 = vadd.f32 %v689_v60, %v661_v58 }
 0x10b   : > { %v634_v1 = vpop.f32.mrf.mxu0 }
 0x10c   : > { %v699_v2 = vmax.f32 %v690_v63, 0.0  ;;  %v635_v3 = vadd.f32 %v634_v1, %v606_v61 }
 0x10d   : > { %v663_v5 = vpop.f32.mrf.mxu1 }
 0x10e   : > { %741 = vmatmul.f32.gmra.mxu3 %v699_v2  ;;  %v664_v9 = vadd.f32 %v663_v5, %v635_v3 }
 0x111   : > { %v692_v11 = vpop.f32.mrf.mxu2 }
 0x112   : > { %v693_v13 = vadd.f32 %v692_v11, %v664_v9 }
 0x113   : > { %v637_v15 = vpop.f32.mrf.mxu0 }
 0x114   : > { %v700_v16 = vmax.f32 %v693_v13, 0.0  ;;  %v638_v17 = vadd.f32 %v637_v15, %v609_v12 }
 0x115   : > { %v666_v19 = vpop.f32.mrf.mxu1 }
 0x116   : > { %744 = vmatmul.f32.gmra.mxu3 %v700_v16  ;;  %v667_v20 = vadd.f32 %v666_v19, %v638_v17 }
 0x119   : > { %v695_v21 = vpop.f32.mrf.mxu2 }
 0x11a   : > { %v696_v22 = vadd.f32 %v695_v21, %v667_v20 }
 0x11c   : > { %v701_v23 = vmax.f32 %v696_v22, 0.0 }
 0x11e   : > { %747 = vmatmul.f32.gmra.mxu3 %v701_v23 }
 0x189   : > { %v739_v28 = vpop.f32.mrf.mxu3 }
 0x18a   : > { %v740_v29 = vadd.f32 %v1085_v27, %v739_v28 }
 0x18c   : > { %v751_v30 = vmax.f32 %v740_v29, 0.0 }
 0x18e   : > { %791 = vmatmul.f32.vlgmr.msra.gmra.mxu0 %v751_v30 }
 0x191   : > { %v742_v31 = vpop.f32.mrf.mxu3 }
 0x192   : > { %v743_v32 = vadd.f32 %v1085_v27, %v742_v31 }
 0x194   : > { %v752_v33 = vmax.f32 %v743_v32, 0.0 }
 0x196   : > { %794 = vmatmul.f32.vlgmr.msra.gmra.mxu1 %v752_v33 }
 0x199   : > { %v745_v34 = vpop.f32.mrf.mxu3 }
 0x19a   : > { %v746_v35 = vadd.f32 %v1085_v27, %v745_v34 }
 0x19c   : > { %v753_v36 = vmax.f32 %v746_v35, 0.0 }
 0x19e   : > { %797 = vmatmul.f32.vlgmr.msra.gmra.mxu2 %v753_v36 }
 0x1a1   : > { %v748_v37 = vpop.f32.mrf.mxu3 }
 0x1a2   : > { %v749_v38 = vadd.f32 %v1085_v27, %v748_v37 }
 0x1a4   : > { %v754_v39 = vmax.f32 %v749_v38, 0.0 }
 0x1a6   : > { %800 = vmatmul.f32.vlgmr.msra.gmra.mxu3 %v754_v39 }
 0x20b   : > { %v792_v41 = vpop.f32.mrf.mxu0 }
 0x20c   : > { %v793_v42 = vadd.f32 %v1086_v40, %v792_v41 }
 0x20e   : > { %804 = vst [vmem:[%s349_s16] sm:$0xff] %v793_v42 }
 0x213   : > { %v795_v43 = vpop.f32.mrf.mxu1 }
 0x214   : > { %v796_v44 = vadd.f32 %v1086_v40, %v795_v43 }
 0x216   : > { %805 = vst [vmem:[%s349_s16 + $0x8] sm:$0xff] %v796_v44 }
 0x221   : > { %v798_v45 = vpop.f32.mrf.mxu2 }
 0x222   : > { %v799_v46 = vadd.f32 %v1086_v40, %v798_v45 }
 0x224   : > { %806 = vst [vmem:[%s349_s16 + $0x10] sm:$0xff] %v799_v46 }
 0x229   : > { %v801_v47 = vpop.f32.mrf.mxu3 }
 0x22a   : > { %v802_v48 = vadd.f32 %v1086_v40, %v801_v47 }
 0x22c   : > { %807 = vst [vmem:[%s349_s16 + $0x18] sm:$0xff] %v802_v48 }
 0x22d   : > { %1234 = shalt.err (!%p1231_p10)
}
 0x22e   : > { %s1290_s19 = smov 128   ;;  %s1291_s13 = smov 8  }
 0x22f   : > { %1015 = dma.vmem_to_hbm [thread:$0]  (%p1415_p7), %s822_s23, 512, %s824_s3, %s809_s5, %s1290_s19, %s1290_s19, %s1291_s13  }
 0x230 PF: > { %s838_s14 = sand.u32 1, %s1269_s24   ;;  %p1557_p12 = scmp.ge.s32.totalorder %s1281_s27, 2 }
 0x231   : > { %s839_s16 = scalar_lea.sflag [#allocation4], %s838_s14 }
 0x232   : > { %p1032_p13 = pnand %p1557_p12, %p1367_p6 }
 0x234   : > { %p1033_p0 = pneg %p1032_p13 }
 0x236   : > { %1264 = dma.done.wait (%p1033_p0), %s839_s16, 512  }
 0x237   : > { %1266 = vsyncadd (%p1033_p0), %s839_s16, 4294966784  ;;  %p22_p3 = scmp.ge.s32.totalorder %s1399_s11, 4   ;;  %s1558_s24 = smov %s1273_s25 }
 0x238   : > { %s1559_s25 = smov %s1277_s26  ;;  %s1560_s26 = smov %s1411_s17 }
 0x239   : > { %s1561_s27 = smov %s1399_s11  ;;  %24 = sbr.rel (!%p22_p3) target bundleno = 11 (0xb), region = 105 }
 0x23e   :  { %845 = vsyncpa [#allocation3], 1 }
 0x23f   :  { %847 = vsyncpa [#allocation3 + $0x1], 1 }
 0x240   :  { %848 = vsyncpa [#allocation6], 1 }
 0x241   :  { %849 = vsyncpa [#allocation9], 1 }
 0x242   :  { %850 = vsyncpa [#allocation4], 1 }
 0x243   :  { %852 = vsyncpa [#allocation4 + $0x1], 1 }

</bundles_post_ra>
